<compile_context>
chip_gen: v5e
topology: v5e:2x2
jax: 0.10.0
libtpu: 0.0.40
codegen_flags: <defaults>
</compile_context>

<pallas_src>
import functools

import jax
import jax.numpy as jnp
from jax.experimental import pallas as pl
from jax.experimental.pallas import tpu as pltpu


# --------------------------------------------------------------------------- #
# In-kernel pair-preserving lane reverse (XLU rolls + VPU parity selects).
# --------------------------------------------------------------------------- #
def _reverse_pairs(x, seg):
    """Reverse the order of adjacent (re, im) float pairs inside every
    contiguous length-`seg` segment along the last axis of `x`.

    `seg` (== 2*W) must be a power of two. The butterfly cascade skips the
    final within-pair stage so real/imag components stay in place. Bit-exact,
    pure data movement."""
    L = x.shape[-1]
    if seg <= 2:
        return x                       # W == 1: flip is the identity
    assert L % seg == 0 and (seg & (seg - 1)) == 0
    lane = jax.lax.broadcasted_iota(jnp.int32, x.shape, x.ndim - 1)
    b = seg
    while b > 2:                       # stop BEFORE the within-pair swap
        h = b // 2
        # jnp.roll semantics: roll(x, s)[j] == x[(j - s) % L]
        fwd = pltpu.roll(x, L - h, axis=x.ndim - 1)   # fwd[j] = x[j + h]
        bwd = pltpu.roll(x, h, axis=x.ndim - 1)       # bwd[j] = x[j - h]
        x = jnp.where((lane & (b - 1)) < h, fwd, bwd)
        b = h
    return x


def _flip_pairs_kernel(x_ref, o_ref, *, seg):
    o_ref[...] = _reverse_pairs(x_ref[...], seg)


# --------------------------------------------------------------------------- #
# Tiling helpers.
# --------------------------------------------------------------------------- #
def _vmem_budget():
    """(per-block byte target, vmem_limit_bytes), gated on physical VMEM."""
    cap = 64 * 1024 * 1024
    try:
        cap = int(getattr(pltpu.get_tpu_info(), "vmem_capacity_bytes", cap)) or cap
    except Exception:
        pass
    if cap >= 96 * 1024 * 1024:                # v5e / v6e: 128 MiB physical VMEM
        return 4 * 1024 * 1024, 64 * 1024 * 1024
    return 2 * 1024 * 1024, 32 * 1024 * 1024   # v7x: 64 MiB per TensorCore


def _pick_row_tile(rows, row_bytes, target_bytes):
    """Row-tile height: a multiple of 8, <= target_bytes per block, and small
    enough that the grid has >= 2 steps (so both v7x TensorCores get work)."""
    if rows <= 8:
        return rows                            # full-height block (allowed)
    cap = max(1, target_bytes // max(row_bytes, 1))
    tr = min(rows, cap, max(8, rows // 2))
    return max(8, (tr // 8) * 8)


# --------------------------------------------------------------------------- #
# Pallas dispatch on the interleaved float view.
# --------------------------------------------------------------------------- #
def _flip_pairs_pallas(flat, twoW):
    """flat: float32 (R, 2W) of interleaved (re, im). Returns the W-flip."""
    R = flat.shape[0]
    target_bytes, vmem_limit = _vmem_budget()

    if twoW > 128 and twoW % 128 == 0:
        # Large-W path: the coarse reverse of 128-float (64-complex) blocks is
        # done by the OUTPUT index_map (free DMA addressing); only the fixed
        # 6-stage within-block pair-preserving reverse runs in-kernel.
        nW = twoW // 128
        TR = _pick_row_tile(R, 128 * flat.dtype.itemsize, target_bytes)
        return pl.pallas_call(
            functools.partial(_flip_pairs_kernel, seg=128),
            out_shape=jax.ShapeDtypeStruct((R, twoW), flat.dtype),
            grid_spec=pltpu.PrefetchScalarGridSpec(
                num_scalar_prefetch=0,
                grid=(pl.cdiv(R, TR), nW),
                in_specs=[pl.BlockSpec((TR, 128), lambda i, wj: (i, wj))],
                out_specs=pl.BlockSpec((TR, 128), lambda i, wj: (i, nW - 1 - wj)),
            ),
            compiler_params=pltpu.CompilerParams(
                dimension_semantics=("parallel", "parallel"),
                vmem_limit_bytes=vmem_limit,
            ),
            input_output_aliases={0: 0},
        )(flat)

    # Small-W path: pack g whole 2W-float segments per 128-lane row so vregs
    # and stores stay lane-dense (unmasked vst).
    assert (twoW & (twoW - 1)) == 0
    g = min(128 // twoW, R & (-R)) if twoW < 128 else 1
    # TODO(synk): row counts with a tiny power-of-two factor stay lane-sparse;
    # padding R up to a multiple of 128//twoW would cost an extra HBM copy.
    Rp, L = R // g, g * twoW
    x2 = flat.reshape(Rp, L)                   # contiguous rows -> free reshape
    TR = _pick_row_tile(Rp, L * x2.dtype.itemsize, target_bytes)
    blk = pl.BlockSpec((TR, L), lambda i: (i, 0))
    out = pl.pallas_call(
        functools.partial(_flip_pairs_kernel, seg=twoW),
        out_shape=jax.ShapeDtypeStruct((Rp, L), x2.dtype),
        grid_spec=pltpu.PrefetchScalarGridSpec(
            num_scalar_prefetch=0,
            grid=(pl.cdiv(Rp, TR),),
            in_specs=[blk],
            out_specs=blk,
        ),
        compiler_params=pltpu.CompilerParams(
            dimension_semantics=("parallel",),
            vmem_limit_bytes=vmem_limit,
        ),
        input_output_aliases={0: 0},
    )(x2)
    return out.reshape(R, twoW)


# --------------------------------------------------------------------------- #
# complex64 <-> interleaved float32 reinterpretation.
# --------------------------------------------------------------------------- #
@functools.lru_cache(maxsize=None)
def _complex_bitcast_supported():
    """Probe once (tiny eager op) whether complex64 <-> float32 bitcast works."""
    try:
        z = jnp.zeros((8,), jnp.complex64)
        f = jax.lax.bitcast_convert_type(z, jnp.float32)
        c = jax.lax.bitcast_convert_type(f, jnp.complex64)
        jax.block_until_ready((f, c))
        return f.shape == (8, 2) and c.shape == (8,)
    except Exception:
        return False


def _complex_to_interleaved(x):
    """complex64 (..., W) -> float32 (..., 2W) interleaved (re, im)."""
    if _complex_bitcast_supported():
        xf = jax.lax.bitcast_convert_type(x, jnp.float32)          # (..., W, 2)
    else:
        # Single fused XLA pass (one extra HBM round-trip vs. bitcast).
        xf = jnp.stack([jnp.real(x), jnp.imag(x)], axis=-1)
    return xf.reshape(x.shape[:-1] + (2 * x.shape[-1],))


def _interleaved_to_complex(yf, out_shape):
    """float32 (..., 2W) interleaved -> complex64 of shape `out_shape`."""
    y2 = yf.reshape(out_shape + (2,))
    if _complex_bitcast_supported():
        return jax.lax.bitcast_convert_type(y2, jnp.complex64)
    return jax.lax.complex(y2[..., 0], y2[..., 1])


# --------------------------------------------------------------------------- #
# Flip along W and the random wrapper.
# --------------------------------------------------------------------------- #
def _flip_w_complex64(x):
    W = x.shape[-1]
    twoW = 2 * W
    if not (twoW % 128 == 0 or (twoW & (twoW - 1)) == 0):
        # TODO(synk): widths where 2W is neither a power of two nor a multiple
        # of 128 (e.g. W = 48) fall back to XLA's flip.
        return jnp.flip(x, axis=-1)
    xf = _complex_to_interleaved(x)                   # (..., 2W) float32
    R = xf.size // twoW
    yf = _flip_pairs_pallas(xf.reshape(R, twoW), twoW)
    return _interleaved_to_complex(yf.reshape(xf.shape), x.shape)


def complex_random_horizontal_flip(x, key, p=0.5):
    """JAX/Pallas equivalent of ComplexRandomHorizontalFlip.forward.

    x:   complex64 array (e.g. NCHW), flipped along its last axis w.p. p.
    key: jax.random key for the Bernoulli(p) flip decision.
    """
    u = jax.random.uniform(key, (), dtype=jnp.float32)
    do_flip = u < jnp.float32(p)
    if x.dtype == jnp.complex64:
        flip_fn = _flip_w_complex64
    else:
        # TODO(synk): complex128 (f64) has no Pallas TPU path; exact fallback.
        flip_fn = lambda y: jnp.flip(y, axis=-1)
    # lax.cond: the identity branch touches no HBM when the coin says "no flip".
    return jax.lax.cond(do_flip, flip_fn, lambda y: y, x)


if __name__ == "__main__":
    key = jax.random.PRNGKey(0)
    k_re, k_im, k_flip = jax.random.split(key, 3)

    flip = jax.jit(complex_random_horizontal_flip, static_argnames=("p",))

    def reference(x, key, p):
        u = jax.random.uniform(key, (), dtype=jnp.float32)
        return jnp.where(u < jnp.float32(p), jnp.flip(x, axis=-1), x)

    def check(x, p):
        y = jax.block_until_ready(flip(x, k_flip, p=p))
        expected = reference(x, k_flip, p)
        assert y.shape == x.shape and y.dtype == x.dtype
        assert jnp.array_equal(y.real, expected.real)   # bit-exact data movement
        assert jnp.array_equal(y.imag, expected.imag)

    # Module-scale input: (B, C, H, W) = (2, 4, 16, 16), complex64 NCHW.
    B, C, H, W = 2, 4, 16, 16
    x = jax.lax.complex(
        jax.random.normal(k_re, (B, C, H, W), dtype=jnp.float32),
        jax.random.normal(k_im, (B, C, H, W), dtype=jnp.float32))
    # p=1.0 forces the Pallas flip path, p=0.0 the identity, p=0.5 the default.
    for p in (1.0, 0.0, 0.5):
        check(x, p)

    # Large-W path (block-order reverse via the output index_map): W = 128.
    x_wide = jax.lax.complex(
        jax.random.normal(k_re, (1, 2, 8, 128), dtype=jnp.float32),
        jax.random.normal(k_im, (1, 2, 8, 128), dtype=jnp.float32))
    check(x_wide, 1.0)

    # Ragged row count (cdiv grid with a partial last block).
    x_rag = jax.lax.complex(
        jax.random.normal(k_re, (1, 5, 8, 16), dtype=jnp.float32),
        jax.random.normal(k_im, (1, 5, 8, 16), dtype=jnp.float32))
    check(x_rag, 1.0)

    print("KERNEL_OK")
</pallas_src>

<mosaic_0001>
module attributes {stable_mosaic.version = 11 : i64} {
  func.func @_flip_pairs_kernel(%arg0: i32, %arg1: memref<16x128xf32, #tpu.memory_space<vmem>>, %arg2: memref<16x128xf32, #tpu.memory_space<vmem>>) attributes {dimension_semantics = [#tpu.dimension_semantics<parallel>], iteration_bounds = array<i64: 2>, scalar_prefetch = 0 : i64, scratch_operands = 0 : i64, tpu.core_type = #tpu.core_type<tc>, window_params = [{transform_indices = @transform_0, window_bounds = array<i64: 16, 128>}, {transform_indices = @transform_1, window_bounds = array<i64: 16, 128>}]} {
    %c0 = arith.constant 0 : index
    %c0_0 = arith.constant 0 : index
    %0 = vector.load %arg1[%c0, %c0_0] : memref<16x128xf32, #tpu.memory_space<vmem>>, vector<16x128xf32>
    %1 = tpu.iota {dimensions = array<i32: 1>} : vector<16x128xi32>
    %c112_i32 = arith.constant 112 : i32
    %2 = tpu.dynamic_rotate %0 by %c112_i32 dim 1 : vector<16x128xf32>, i32 -> vector<16x128xf32>
    %c16_i32 = arith.constant 16 : i32
    %3 = tpu.dynamic_rotate %0 by %c16_i32 dim 1 : vector<16x128xf32>, i32 -> vector<16x128xf32>
    %c31_i32 = arith.constant 31 : i32
    %4 = vector.broadcast %c31_i32 : i32 to vector<16x128xi32>
    %5 = arith.andi %1, %4 : vector<16x128xi32>
    %c16_i32_1 = arith.constant 16 : i32
    %6 = vector.broadcast %c16_i32_1 : i32 to vector<16x128xi32>
    %7 = arith.cmpi slt, %5, %6 : vector<16x128xi32>
    %8 = arith.select %7, %2, %3 : vector<16x128xi1>, vector<16x128xf32>
    %c120_i32 = arith.constant 120 : i32
    %9 = tpu.dynamic_rotate %8 by %c120_i32 dim 1 : vector<16x128xf32>, i32 -> vector<16x128xf32>
    %c8_i32 = arith.constant 8 : i32
    %10 = tpu.dynamic_rotate %8 by %c8_i32 dim 1 : vector<16x128xf32>, i32 -> vector<16x128xf32>
    %c15_i32 = arith.constant 15 : i32
    %11 = vector.broadcast %c15_i32 : i32 to vector<16x128xi32>
    %12 = arith.andi %1, %11 : vector<16x128xi32>
    %c8_i32_2 = arith.constant 8 : i32
    %13 = vector.broadcast %c8_i32_2 : i32 to vector<16x128xi32>
    %14 = arith.cmpi slt, %12, %13 : vector<16x128xi32>
    %15 = arith.select %14, %9, %10 : vector<16x128xi1>, vector<16x128xf32>
    %c124_i32 = arith.constant 124 : i32
    %16 = tpu.dynamic_rotate %15 by %c124_i32 dim 1 : vector<16x128xf32>, i32 -> vector<16x128xf32>
    %c4_i32 = arith.constant 4 : i32
    %17 = tpu.dynamic_rotate %15 by %c4_i32 dim 1 : vector<16x128xf32>, i32 -> vector<16x128xf32>
    %c7_i32 = arith.constant 7 : i32
    %18 = vector.broadcast %c7_i32 : i32 to vector<16x128xi32>
    %19 = arith.andi %1, %18 : vector<16x128xi32>
    %c4_i32_3 = arith.constant 4 : i32
    %20 = vector.broadcast %c4_i32_3 : i32 to vector<16x128xi32>
    %21 = arith.cmpi slt, %19, %20 : vector<16x128xi32>
    %22 = arith.select %21, %16, %17 : vector<16x128xi1>, vector<16x128xf32>
    %c126_i32 = arith.constant 126 : i32
    %23 = tpu.dynamic_rotate %22 by %c126_i32 dim 1 : vector<16x128xf32>, i32 -> vector<16x128xf32>
    %c2_i32 = arith.constant 2 : i32
    %24 = tpu.dynamic_rotate %22 by %c2_i32 dim 1 : vector<16x128xf32>, i32 -> vector<16x128xf32>
    %c3_i32 = arith.constant 3 : i32
    %25 = vector.broadcast %c3_i32 : i32 to vector<16x128xi32>
    %26 = arith.andi %1, %25 : vector<16x128xi32>
    %c2_i32_4 = arith.constant 2 : i32
    %27 = vector.broadcast %c2_i32_4 : i32 to vector<16x128xi32>
    %28 = arith.cmpi slt, %26, %27 : vector<16x128xi32>
    %29 = arith.select %28, %23, %24 : vector<16x128xi1>, vector<16x128xf32>
    %c0_5 = arith.constant 0 : index
    %c0_6 = arith.constant 0 : index
    %30 = vector.load %arg2[%c0_5, %c0_6] : memref<16x128xf32, #tpu.memory_space<vmem>>, vector<16x128xf32>
    tpu.vector_store %arg2[%c0_5, %c0_6], %29 {strides = array<i32>} : memref<16x128xf32, #tpu.memory_space<vmem>>, vector<16x128xf32>,
    return
  }
  func.func @transform_0(%arg0: i32) -> (i32, i32) {
    %c0_i32 = arith.constant 0 : i32
    %c0_i32_0 = arith.constant 0 : i32
    return %arg0, %c0_i32 : i32, i32
  }
  func.func @transform_1(%arg0: i32) -> (i32, i32) {
    %c0_i32 = arith.constant 0 : i32
    %c0_i32_0 = arith.constant 0 : i32
    return %arg0, %c0_i32 : i32, i32
  }
}

</mosaic_0001>

<bundles_post_ra>
// kernel: custom-call.1
= control target key start
LH: loop header
LB: loop body
LE: loop exit
PB: predicated region body
PF: predicated region fallthrough
CT: control target
= control target key end

     0   :  { %s159_s0 = inlined_call_operand.hbm [shape: c64[2,4,16,16], index: 0, kind: input, shape index: {}]   ;;  %s160_s1 = inlined_call_operand.hbm [shape: f32[2,4,16,16], index: 1, kind: output, shape index: {}]  }
   0x1   :  { %s2_s8 = scalar_lea.hbm %s159_s0, 128 }
   0x2   :  { %3 = vsyncpa [#allocation2], 0 }
   0x3   :  { %4 = vsyncpa [#allocation1], 0  ;;  %s6_s9 = sshll.u32 %s2_s8, 4  ;;  %s141_s10 = smov [#allocation3]   ;;  %s7_s9 = int_to_ptr.hbm [resolvable:$true] %s6_s9 }
   0x4   :  { %s8_s11 = sshll.u32 %s141_s10, 4  ;;  %s9_s11 = int_to_ptr.vmem [resolvable:$true] %s8_s11 }
   0x5   :  { %11 = dma.hbm_to_vmem [thread:$0]  %s7_s9, 2048, %s9_s11, [#allocation1] }
   0x6   :  { %137 = dma.done.wait [#allocation1], 2048  }
   0x7   :  { %138 = vsyncadd [#allocation1], 4294965248  ;;  %v14_v0 = vld [vmem:[#allocation3] sm:$0xff]  ;;  %v18_v1 = vld [vmem:[#allocation3 + $0x8] sm:$0xff]  ;;  %s142_s0 = smov [#allocation0]   ;;  %s79_s15 = sshll.u32 %s160_s1, 4  ;;  %s80_s15 = int_to_ptr.hbm [resolvable:$true] %s79_s15 }
   0x8   :  { %v22_v2 = vld [vmem:[#allocation3 + $0x10] sm:$0xff]  ;;  %15 = vst [vmem:[#allocation0] sm:$0xff] %v14_v0  ;;  %v26_v3 = vld [vmem:[#allocation3 + $0x18] sm:$0xff]  ;;  %v30_v4 = vld [vmem:[#allocation3 + $0x20] sm:$0xff]  ;;  %s77_s12 = sshll.u32 %s142_s0, 4  ;;  %s78_s12 = int_to_ptr.vmem [resolvable:$true] %s77_s12 }
   0x9   :  { %19 = vst [vmem:[#allocation0 + $0x8] sm:$0xff] %v18_v1  ;;  %v34_v5 = vld [vmem:[#allocation3 + $0x28] sm:$0xff]  ;;  %v38_v6 = vld [vmem:[#allocation3 + $0x30] sm:$0xff]  ;;  %v42_v7 = vld [vmem:[#allocation3 + $0x38] sm:$0xff] }
   0xa   :  { %23 = vst [vmem:[#allocation0 + $0x10] sm:$0xff] %v22_v2  ;;  %v46_v8 = vld [vmem:[#allocation3 + $0x40] sm:$0xff]  ;;  %v50_v9 = vld [vmem:[#allocation3 + $0x48] sm:$0xff]  ;;  %v54_v10 = vld [vmem:[#allocation3 + $0x50] sm:$0xff] }
   0xb   :  { %27 = vst [vmem:[#allocation0 + $0x18] sm:$0xff] %v26_v3  ;;  %v58_v11 = vld [vmem:[#allocation3 + $0x58] sm:$0xff]  ;;  %v62_v12 = vld [vmem:[#allocation3 + $0x60] sm:$0xff]  ;;  %v66_v13 = vld [vmem:[#allocation3 + $0x68] sm:$0xff] }
   0xc   :  { %31 = vst [vmem:[#allocation0 + $0x20] sm:$0xff] %v30_v4  ;;  %v70_v14 = vld [vmem:[#allocation3 + $0x70] sm:$0xff]  ;;  %v74_v15 = vld [vmem:[#allocation3 + $0x78] sm:$0xff] }
   0xd   :  { %35 = vst [vmem:[#allocation0 + $0x28] sm:$0xff] %v34_v5 }
   0xe   :  { %39 = vst [vmem:[#allocation0 + $0x30] sm:$0xff] %v38_v6 }
   0xf   :  { %43 = vst [vmem:[#allocation0 + $0x38] sm:$0xff] %v42_v7 }
  0x10   :  { %47 = vst [vmem:[#allocation0 + $0x40] sm:$0xff] %v46_v8 }
  0x11   :  { %51 = vst [vmem:[#allocation0 + $0x48] sm:$0xff] %v50_v9 }
  0x12   :  { %55 = vst [vmem:[#allocation0 + $0x50] sm:$0xff] %v54_v10 }
  0x13   :  { %59 = vst [vmem:[#allocation0 + $0x58] sm:$0xff] %v58_v11 }
  0x14   :  { %63 = vst [vmem:[#allocation0 + $0x60] sm:$0xff] %v62_v12 }
  0x15   :  { %67 = vst [vmem:[#allocation0 + $0x68] sm:$0xff] %v66_v13 }
  0x16   :  { %71 = vst [vmem:[#allocation0 + $0x70] sm:$0xff] %v70_v14 }
  0x17   :  { %75 = vst [vmem:[#allocation0 + $0x78] sm:$0xff] %v74_v15 }
  0x18   :  { %82 = dma.vmem_to_hbm [thread:$0]  %s78_s12, 2048, %s80_s15, [#allocation2] }
  0x19   :  { %139 = dma.done.wait [#allocation2], 2048  }
  0x1a   :  { %140 = vsyncadd [#allocation2], 4294965248 }
  0x1b   :  { %85 = vsyncpa [#allocation1], 1 }
  0x1c   :  { %86 = vsyncpa [#allocation2], 1 }

// kernel: custom-call
= control target key start
LH: loop header
LB: loop body
LE: loop exit
PB: predicated region body
PF: predicated region fallthrough
CT: control target
= control target key end

     0   :  { %2 = vsyncpa [#allocation2], 0  ;;  %s158_s0 = inlined_call_operand.hbm [shape: c64[2,4,16,16], index: 0, kind: input, shape index: {}]   ;;  %s159_s1 = inlined_call_operand.hbm [shape: f32[2,4,16,16], index: 1, kind: output, shape index: {}]  }
   0x1   :  { %3 = vsyncpa [#allocation1], 0  ;;  %s5_s8 = sshll.u32 %s158_s0, 4  ;;  %s140_s9 = smov [#allocation3]   ;;  %s6_s8 = int_to_ptr.hbm [resolvable:$true] %s5_s8 }
   0x2   :  { %s7_s10 = sshll.u32 %s140_s9, 4  ;;  %s8_s10 = int_to_ptr.vmem [resolvable:$true] %s7_s10 }
   0x3   :  { %10 = dma.hbm_to_vmem [thread:$0]  %s6_s8, 2048, %s8_s10, [#allocation1] }
   0x4   :  { %136 = dma.done.wait [#allocation1], 2048  }
   0x5   :  { %137 = vsyncadd [#allocation1], 4294965248  ;;  %v13_v0 = vld [vmem:[#allocation3] sm:$0xff]  ;;  %v17_v1 = vld [vmem:[#allocation3 + $0x8] sm:$0xff]  ;;  %s141_s0 = smov [#allocation0]   ;;  %s78_s14 = sshll.u32 %s159_s1, 4  ;;  %s79_s14 = int_to_ptr.hbm [resolvable:$true] %s78_s14 }
   0x6   :  { %v21_v2 = vld [vmem:[#allocation3 + $0x10] sm:$0xff]  ;;  %14 = vst [vmem:[#allocation0] sm:$0xff] %v13_v0  ;;  %v25_v3 = vld [vmem:[#allocation3 + $0x18] sm:$0xff]  ;;  %v29_v4 = vld [vmem:[#allocation3 + $0x20] sm:$0xff]  ;;  %s76_s11 = sshll.u32 %s141_s0, 4  ;;  %s77_s11 = int_to_ptr.vmem [resolvable:$true] %s76_s11 }
   0x7   :  { %18 = vst [vmem:[#allocation0 + $0x8] sm:$0xff] %v17_v1  ;;  %v33_v5 = vld [vmem:[#allocation3 + $0x28] sm:$0xff]  ;;  %v37_v6 = vld [vmem:[#allocation3 + $0x30] sm:$0xff]  ;;  %v41_v7 = vld [vmem:[#allocation3 + $0x38] sm:$0xff] }
   0x8   :  { %22 = vst [vmem:[#allocation0 + $0x10] sm:$0xff] %v21_v2  ;;  %v45_v8 = vld [vmem:[#allocation3 + $0x40] sm:$0xff]  ;;  %v49_v9 = vld [vmem:[#allocation3 + $0x48] sm:$0xff]  ;;  %v53_v10 = vld [vmem:[#allocation3 + $0x50] sm:$0xff] }
   0x9   :  { %26 = vst [vmem:[#allocation0 + $0x18] sm:$0xff] %v25_v3  ;;  %v57_v11 = vld [vmem:[#allocation3 + $0x58] sm:$0xff]  ;;  %v61_v12 = vld [vmem:[#allocation3 + $0x60] sm:$0xff]  ;;  %v65_v13 = vld [vmem:[#allocation3 + $0x68] sm:$0xff] }
   0xa   :  { %30 = vst [vmem:[#allocation0 + $0x20] sm:$0xff] %v29_v4  ;;  %v69_v14 = vld [vmem:[#allocation3 + $0x70] sm:$0xff]  ;;  %v73_v15 = vld [vmem:[#allocation3 + $0x78] sm:$0xff] }
   0xb   :  { %34 = vst [vmem:[#allocation0 + $0x28] sm:$0xff] %v33_v5 }
   0xc   :  { %38 = vst [vmem:[#allocation0 + $0x30] sm:$0xff] %v37_v6 }
   0xd   :  { %42 = vst [vmem:[#allocation0 + $0x38] sm:$0xff] %v41_v7 }
   0xe   :  { %46 = vst [vmem:[#allocation0 + $0x40] sm:$0xff] %v45_v8 }
   0xf   :  { %50 = vst [vmem:[#allocation0 + $0x48] sm:$0xff] %v49_v9 }
  0x10   :  { %54 = vst [vmem:[#allocation0 + $0x50] sm:$0xff] %v53_v10 }
  0x11   :  { %58 = vst [vmem:[#allocation0 + $0x58] sm:$0xff] %v57_v11 }
  0x12   :  { %62 = vst [vmem:[#allocation0 + $0x60] sm:$0xff] %v61_v12 }
  0x13   :  { %66 = vst [vmem:[#allocation0 + $0x68] sm:$0xff] %v65_v13 }
  0x14   :  { %70 = vst [vmem:[#allocation0 + $0x70] sm:$0xff] %v69_v14 }
  0x15   :  { %74 = vst [vmem:[#allocation0 + $0x78] sm:$0xff] %v73_v15 }
  0x16   :  { %81 = dma.vmem_to_hbm [thread:$0]  %s77_s11, 2048, %s79_s14, [#allocation2] }
  0x17   :  { %138 = dma.done.wait [#allocation2], 2048  }
  0x18   :  { %139 = vsyncadd [#allocation2], 4294965248 }
  0x19   :  { %84 = vsyncpa [#allocation1], 1 }
  0x1a   :  { %85 = vsyncpa [#allocation2], 1 }

// kernel: branch_1_fun.1
= control target key start
LH: loop header
LB: loop body
LE: loop exit
PB: predicated region body
PF: predicated region fallthrough
CT: control target
= control target key end

     0   :  { %s283_s6 = smov 0   ;;  %s307_s0 = inlined_call_operand.vmem [shape: f32[32,128], index: 0, kind: input, shape index: {}, may-alias: {0,1}]   ;;  %s308_s1 = inlined_call_operand.vmem [shape: f32[32,128], index: 1, kind: output, shape index: {}, may-alias: {0,1}]  }
   0x1 LB: > { %s230_s7 = sadd.s32 4294967295, %s263_s6   ;;  %p234_p0 = scmp.ge.s32.totalorder %s263_s6, 1  ;;  %s263_s6 = sphi %s283_s6, %s11_s6  }
   0x2   : > { %p88_p1 = scmp.lt.s32.totalorder %s263_s6, 3 }
   0x4   : > { %p89_p2 = pnand %p234_p0, %p88_p1 }
   0x5   : > { %s235_s8 = sshll.u32 (!%p89_p2), %s230_s7, 1  ;;  %s265_s13 = smov (!%p89_p2), 112  }
   0x6   : > { %92 = sbr.rel (%p89_p2) target bundleno = 488 (0x1e8), region = 24  ;;  %p109_p3 = scmp.lt.s32.totalorder (!%p89_p2), %s235_s8, 3 }
   0x7   : > { %s266_s14 = smov (!%p89_p2), 16   ;;  %s267_s15 = smov (!%p89_p2), 8  }
   0x8   : > { %s268_s16 = smov (!%p89_p2), 120   ;;  %s269_s17 = smov (!%p89_p2), 4  }
   0x9   : > { %s270_s18 = smov (!%p89_p2), 124   ;;  %s271_s19 = smov (!%p89_p2), 2  }
   0xa   : > { %s272_s20 = smov (!%p89_p2), 126  }
   0xb   : > { %s310_s8 = smov (!%p109_p3, %s235_s8), 3  ;;  %v122_v2 = vlaneseq }
   0xc   : > { %s236_s9 = sshll.u32 %s310_s8, 3 }
   0xd   : > { %s112_s12 = scalar_lea.vmem %s307_s0, %s236_s9  ;;  %v123_v3 = vand.u32 127, %v122_v2  ;;  %s118_s23 = scalar_lea.vmem %s308_s1, %s236_s9 }
   0xe   : > { %v121_v0 = vld [vmem:[%s112_s12 + $0x8] sm:$0xff]  ;;  %v120_v1 = vld [vmem:[%s112_s12] sm:$0xff] }
   0xf   : > { %126 = vrot.lane.b32.xlu1 %v121_v0, %s265_s13  ;;  %124 = vrot.lane.b32.xlu0 %v120_v1, %s265_s13  ;;  %v132_v6 = vand.u32 31, %v123_v3  ;;  %v144_v12 = vand.u32 15, %v123_v3  ;;  %v156_v18 = vand.u32 7, %v123_v3  ;;  %v168_v25 = vand.u32 3, %v123_v3 }
  0x11   : > { %vm133_vm0 = vcmp.lt.s32.totalorder %v132_v6, 16  ;;  %vm145_vm1 = vcmp.lt.s32.totalorder %v144_v12, 8  ;;  %vm157_vm2 = vcmp.lt.s32.totalorder %v156_v18, 4  ;;  %vm169_vm3 = vcmp.lt.s32.totalorder %v168_v25, 2 }
  0x17   : > { %130 = vrot.lane.b32.xlu1 %v121_v0, %s266_s14  ;;  %128 = vrot.lane.b32.xlu0 %v120_v1, %s266_s14 }
  0x81   : > { %v127_v4 = vpop.permute.xlu1 %126  ;;  %v125_v5 = vpop.permute.xlu0 %124 }
  0x89   : > { %v131_v7 = vpop.permute.xlu1 %130  ;;  %v129_v8 = vpop.permute.xlu0 %128 }
  0x8a   : > { %v135_v9 = vsel %vm133_vm0, %v127_v4, %v131_v7  ;;  %v134_v10 = vsel %vm133_vm0, %v125_v5, %v129_v8 }
  0x8b   : > { %142 = vrot.lane.b32.xlu1 %v135_v9, %s267_s15  ;;  %138 = vrot.lane.b32.xlu0 %v135_v9, %s268_s16 }
  0x8c   : > { %136 = vrot.lane.b32.xlu2 %v134_v10, %s268_s16 }
  0x94   : > { %140 = vrot.lane.b32.xlu2 %v134_v10, %s267_s15 }
  0xe6   : > { %v137_v11 = vpop.permute.xlu2 %136 }
  0xee   : > { %v141_v13 = vpop.permute.xlu2 %140 }
  0xef   : > { %v146_v14 = vsel %vm145_vm1, %v137_v11, %v141_v13 }
  0xf0   : > { %152 = vrot.lane.b32.xlu0 %v146_v14, %s269_s17  ;;  %148 = vrot.lane.b32.xlu2 %v146_v14, %s270_s18 }
  0xfd   : > { %v143_v15 = vpop.permute.xlu1 %142  ;;  %v139_v16 = vpop.permute.xlu0 %138 }
  0xfe   : > { %v147_v17 = vsel %vm145_vm1, %v139_v16, %v143_v15 }
  0xff   : > { %154 = vrot.lane.b32.xlu2 %v147_v17, %s269_s17  ;;  %150 = vrot.lane.b32.xlu1 %v147_v17, %s270_s18 }
 0x14a   : > { %v149_v19 = vpop.permute.xlu2 %148 }
 0x159   : > { %v155_v22 = vpop.permute.xlu2 %154 }
 0x162   : > { %v153_v20 = vpop.permute.xlu0 %152 }
 0x163   : > { %v158_v21 = vsel %vm157_vm2, %v149_v19, %v153_v20 }
 0x164   : > { %164 = vrot.lane.b32.xlu1 %v158_v21, %s271_s19  ;;  %160 = vrot.lane.b32.xlu0 %v158_v21, %s272_s20 }
 0x171   : > { %v151_v23 = vpop.permute.xlu1 %150 }
 0x172   : > { %v159_v24 = vsel %vm157_vm2, %v151_v23, %v155_v22 }
 0x173   : > { %162 = vrot.lane.b32.xlu2 %v159_v24, %s272_s20  ;;  %166 = vrot.lane.b32.xlu0 %v159_v24, %s271_s19 }
 0x1cd   : > { %v163_v29 = vpop.permute.xlu2 %162 }
 0x1d6   : > { %v165_v26 = vpop.permute.xlu1 %164  ;;  %v161_v27 = vpop.permute.xlu0 %160 }
 0x1d7   : > { %v170_v28 = vsel %vm169_vm3, %v161_v27, %v165_v26 }
 0x1d8   : > { %172 = vst [vmem:[%s118_s23] sm:$0xff] %v170_v28 }
 0x1e5   : > { %v167_v30 = vpop.permute.xlu0 %166 }
 0x1e6   : > { %v171_v31 = vsel %vm169_vm3, %v163_v29, %v167_v30 }
 0x1e7   : > { %173 = vst [vmem:[%s118_s23 + $0x8] sm:$0xff] %v171_v31 }
 0x1e8 PF: > { %s11_s6 = sadd.s32 1, %s263_s6  }
 0x1e9   : > { %p8_p4 = scmp.ge.s32.totalorder %s11_s6, 4  }
 0x1eb   :  { %10 = sbr.rel (!%p8_p4) target bundleno = 1 (0x1), region = 54 }

// kernel: custom-call.2
= control target key start
LH: loop header
LB: loop body
LE: loop exit
PB: predicated region body
PF: predicated region fallthrough
CT: control target
= control target key end

     0   :  { %s315_s0 = inlined_call_operand.hbm [shape: f32[2,4,16,16], index: 0, kind: input, shape index: {}]   ;;  %s316_s1 = inlined_call_operand.hbm [shape: f32[2,4,16,16], index: 1, kind: input, shape index: {}]   ;;  %s317_s2 = inlined_call_operand.hbm [shape: c64[2,4,16,16], index: 2, kind: output, shape index: {}]  }
   0x1   :  { %s3_s11 = scalar_lea.hbm %s317_s2, 128 }
   0x2   :  { %4 = vsyncpa [#allocation2], 0 }
   0x3   :  { %5 = vsyncpa [#allocation1], 0  ;;  %s7_s14 = sshll.u32 %s315_s0, 4  ;;  %s280_s15 = smov [#allocation3]   ;;  %s8_s14 = int_to_ptr.hbm [resolvable:$true] %s7_s14 }
   0x4   :  { %s9_s16 = sshll.u32 %s280_s15, 4  ;;  %s10_s16 = int_to_ptr.vmem [resolvable:$true] %s9_s16 }
   0x5   :  { %12 = dma.hbm_to_vmem [thread:$0]  %s8_s14, 2048, %s10_s16, [#allocation1] }
   0x6   :  { %272 = dma.done.wait [#allocation1], 2048  }
   0x7   :  { %273 = vsyncadd [#allocation1], 4294965248  ;;  %v15_v0 = vld [vmem:[#allocation3] sm:$0xff]  ;;  %v19_v1 = vld [vmem:[#allocation3 + $0x8] sm:$0xff]  ;;  %s281_s0 = smov [#allocation0]   ;;  %s80_s20 = sshll.u32 %s317_s2, 4  ;;  %s81_s20 = int_to_ptr.hbm [resolvable:$true] %s80_s20 }
   0x8   :  { %v23_v2 = vld [vmem:[#allocation3 + $0x10] sm:$0xff]  ;;  %16 = vst [vmem:[#allocation0] sm:$0xff] %v15_v0  ;;  %v27_v3 = vld [vmem:[#allocation3 + $0x18] sm:$0xff]  ;;  %v31_v4 = vld [vmem:[#allocation3 + $0x20] sm:$0xff]  ;;  %s78_s17 = sshll.u32 %s281_s0, 4  ;;  %s79_s17 = int_to_ptr.vmem [resolvable:$true] %s78_s17 }
   0x9   :  { %20 = vst [vmem:[#allocation0 + $0x8] sm:$0xff] %v19_v1  ;;  %v35_v5 = vld [vmem:[#allocation3 + $0x28] sm:$0xff]  ;;  %v39_v6 = vld [vmem:[#allocation3 + $0x30] sm:$0xff]  ;;  %v43_v7 = vld [vmem:[#allocation3 + $0x38] sm:$0xff] }
   0xa   :  { %24 = vst [vmem:[#allocation0 + $0x10] sm:$0xff] %v23_v2  ;;  %v47_v8 = vld [vmem:[#allocation3 + $0x40] sm:$0xff]  ;;  %v51_v9 = vld [vmem:[#allocation3 + $0x48] sm:$0xff]  ;;  %v55_v10 = vld [vmem:[#allocation3 + $0x50] sm:$0xff] }
   0xb   :  { %28 = vst [vmem:[#allocation0 + $0x18] sm:$0xff] %v27_v3  ;;  %v59_v11 = vld [vmem:[#allocation3 + $0x58] sm:$0xff]  ;;  %v63_v12 = vld [vmem:[#allocation3 + $0x60] sm:$0xff]  ;;  %v67_v13 = vld [vmem:[#allocation3 + $0x68] sm:$0xff] }
   0xc   :  { %32 = vst [vmem:[#allocation0 + $0x20] sm:$0xff] %v31_v4  ;;  %v71_v14 = vld [vmem:[#allocation3 + $0x70] sm:$0xff]  ;;  %v75_v15 = vld [vmem:[#allocation3 + $0x78] sm:$0xff] }
   0xd   :  { %36 = vst [vmem:[#allocation0 + $0x28] sm:$0xff] %v35_v5 }
   0xe   :  { %40 = vst [vmem:[#allocation0 + $0x30] sm:$0xff] %v39_v6 }
   0xf   :  { %44 = vst [vmem:[#allocation0 + $0x38] sm:$0xff] %v43_v7 }
  0x10   :  { %48 = vst [vmem:[#allocation0 + $0x40] sm:$0xff] %v47_v8 }
  0x11   :  { %52 = vst [vmem:[#allocation0 + $0x48] sm:$0xff] %v51_v9 }
  0x12   :  { %56 = vst [vmem:[#allocation0 + $0x50] sm:$0xff] %v55_v10 }
  0x13   :  { %60 = vst [vmem:[#allocation0 + $0x58] sm:$0xff] %v59_v11 }
  0x14   :  { %64 = vst [vmem:[#allocation0 + $0x60] sm:$0xff] %v63_v12 }
  0x15   :  { %68 = vst [vmem:[#allocation0 + $0x68] sm:$0xff] %v67_v13 }
  0x16   :  { %72 = vst [vmem:[#allocation0 + $0x70] sm:$0xff] %v71_v14 }
  0x17   :  { %76 = vst [vmem:[#allocation0 + $0x78] sm:$0xff] %v75_v15 }
  0x18   :  { %83 = dma.vmem_to_hbm [thread:$0]  %s79_s17, 2048, %s81_s20, [#allocation2] }
  0x19   :  { %274 = dma.done.wait [#allocation2], 2048  }
  0x1a   :  { %275 = vsyncadd [#allocation2], 4294965248 }
  0x1b   :  { %86 = vsyncpa [#allocation1], 1 }
  0x1c   :  { %87 = vsyncpa [#allocation2], 1 }
  0x1d   :  { %88 = vsyncpa [#allocation6], 0 }
  0x1e   :  { %89 = vsyncpa [#allocation5], 0  ;;  %s91_s23 = sshll.u32 %s316_s1, 4  ;;  %s282_s24 = smov [#allocation7]   ;;  %s92_s23 = int_to_ptr.hbm [resolvable:$true] %s91_s23 }
  0x1f   :  { %s93_s25 = sshll.u32 %s282_s24, 4  ;;  %s94_s25 = int_to_ptr.vmem [resolvable:$true] %s93_s25 }
  0x20   :  { %96 = dma.hbm_to_vmem [thread:$0]  %s92_s23, 2048, %s94_s25, [#allocation5] }
  0x21   :  { %276 = dma.done.wait [#allocation5], 2048  }
  0x22   :  { %277 = vsyncadd [#allocation5], 4294965248  ;;  %v99_v16 = vld [vmem:[#allocation7] sm:$0xff]  ;;  %v103_v17 = vld [vmem:[#allocation7 + $0x8] sm:$0xff]  ;;  %s283_s1 = smov [#allocation4]   ;;  %s164_s29 = sshll.u32 %s3_s11, 4  ;;  %s165_s29 = int_to_ptr.hbm [resolvable:$true] %s164_s29 }
  0x23   :  { %v107_v18 = vld [vmem:[#allocation7 + $0x10] sm:$0xff]  ;;  %100 = vst [vmem:[#allocation4] sm:$0xff] %v99_v16  ;;  %v111_v19 = vld [vmem:[#allocation7 + $0x18] sm:$0xff]  ;;  %v115_v20 = vld [vmem:[#allocation7 + $0x20] sm:$0xff]  ;;  %s162_s26 = sshll.u32 %s283_s1, 4  ;;  %s163_s26 = int_to_ptr.vmem [resolvable:$true] %s162_s26 }
  0x24   :  { %104 = vst [vmem:[#allocation4 + $0x8] sm:$0xff] %v103_v17  ;;  %v119_v21 = vld [vmem:[#allocation7 + $0x28] sm:$0xff]  ;;  %v123_v22 = vld [vmem:[#allocation7 + $0x30] sm:$0xff]  ;;  %v127_v23 = vld [vmem:[#allocation7 + $0x38] sm:$0xff] }
  0x25   :  { %108 = vst [vmem:[#allocation4 + $0x10] sm:$0xff] %v107_v18  ;;  %v131_v24 = vld [vmem:[#allocation7 + $0x40] sm:$0xff]  ;;  %v135_v25 = vld [vmem:[#allocation7 + $0x48] sm:$0xff]  ;;  %v139_v26 = vld [vmem:[#allocation7 + $0x50] sm:$0xff] }
  0x26   :  { %112 = vst [vmem:[#allocation4 + $0x18] sm:$0xff] %v111_v19  ;;  %v143_v27 = vld [vmem:[#allocation7 + $0x58] sm:$0xff]  ;;  %v147_v28 = vld [vmem:[#allocation7 + $0x60] sm:$0xff]  ;;  %v151_v29 = vld [vmem:[#allocation7 + $0x68] sm:$0xff] }
  0x27   :  { %116 = vst [vmem:[#allocation4 + $0x20] sm:$0xff] %v115_v20  ;;  %v155_v30 = vld [vmem:[#allocation7 + $0x70] sm:$0xff]  ;;  %v159_v31 = vld [vmem:[#allocation7 + $0x78] sm:$0xff] }
  0x28   :  { %120 = vst [vmem:[#allocation4 + $0x28] sm:$0xff] %v119_v21 }
  0x29   :  { %124 = vst [vmem:[#allocation4 + $0x30] sm:$0xff] %v123_v22 }
  0x2a   :  { %128 = vst [vmem:[#allocation4 + $0x38] sm:$0xff] %v127_v23 }
  0x2b   :  { %132 = vst [vmem:[#allocation4 + $0x40] sm:$0xff] %v131_v24 }
  0x2c   :  { %136 = vst [vmem:[#allocation4 + $0x48] sm:$0xff] %v135_v25 }
  0x2d   :  { %140 = vst [vmem:[#allocation4 + $0x50] sm:$0xff] %v139_v26 }
  0x2e   :  { %144 = vst [vmem:[#allocation4 + $0x58] sm:$0xff] %v143_v27 }
  0x2f   :  { %148 = vst [vmem:[#allocation4 + $0x60] sm:$0xff] %v147_v28 }
  0x30   :  { %152 = vst [vmem:[#allocation4 + $0x68] sm:$0xff] %v151_v29 }
  0x31   :  { %156 = vst [vmem:[#allocation4 + $0x70] sm:$0xff] %v155_v30 }
  0x32   :  { %160 = vst [vmem:[#allocation4 + $0x78] sm:$0xff] %v159_v31 }
  0x33   :  { %167 = dma.vmem_to_hbm [thread:$0]  %s163_s26, 2048, %s165_s29, [#allocation6] }
  0x34   :  { %278 = dma.done.wait [#allocation6], 2048  }
  0x35   :  { %279 = vsyncadd [#allocation6], 4294965248 }
  0x36   :  { %170 = vsyncpa [#allocation5], 1 }
  0x37   :  { %171 = vsyncpa [#allocation6], 1 }

</bundles_post_ra>
